<compile_context>
chip_gen: v7x
topology: tpu7x:2x2x1
jax: 0.10.0
libtpu: 0.0.40
codegen_flags: <defaults>
</compile_context>

<pallas_src>
import jax
import jax.numpy as jnp
from jax import lax
from jax.experimental import pallas as pl
from jax.experimental.pallas import tpu as pltpu

KH = KW = 3
STRIDE = 2
LANE = 128


def _round_up(n, m):
    return (n + m - 1) // m * m


# ---------------------------------------------------------------------------
# Kernel
# ---------------------------------------------------------------------------

def _downsample_conv_kernel(x_ref, w_ref, b_ref, o_ref, acc_ref):
    """One (batch, M-tile, tap) grid step of the stride-2 3x3 conv.

    x_ref  : (1, 1, tm, Cp)    bf16  activation patch for this tap
    w_ref  : (9, Cp, Coutp)    bf16  all taps' weights (VMEM resident)
    b_ref  : (1, Coutp)        f32   bias
    o_ref  : (1, tm, Coutp)    f32   output tile (written on last tap only)
    acc_ref: (tm, Coutp)       f32   VMEM accumulator scratch
    """
    k = pl.program_id(2)

    @pl.when(k == 0)
    def _init():
        acc_ref[...] = jnp.zeros_like(acc_ref)

    acc_ref[...] += jnp.dot(x_ref[0, 0], w_ref[k],
                            preferred_element_type=jnp.float32)

    @pl.when(k == pl.num_programs(2) - 1)
    def _finalize():
        o_ref[0] = (acc_ref[...] + b_ref[...]).astype(o_ref.dtype)


# ---------------------------------------------------------------------------
# Tiling helper: largest output-row tile whose VMEM working set fits a budget
# ---------------------------------------------------------------------------

def _pick_row_tile(ho, wo, cp, coutp, budget_bytes=8 * 1024 * 1024):
    smallest_valid = ho
    for tho in range(ho, 0, -1):
        if ho % tho:
            continue
        tm = tho * wo
        # keep the (sublane, lane) dims of every block (8, 128)-aligned unless
        # the block spans the full M axis
        if tm % 8 != 0 and tho != ho:
            continue
        smallest_valid = tho
        need = (2 * tm * cp * 2                     # double-buffered bf16 act tile
                + tm * coutp * 4                    # f32 accumulator scratch
                + 2 * tm * coutp * 4                # double-buffered f32 out tile
                + 2 * KH * KW * cp * coutp * 2      # resident bf16 weights
                + 2 * coutp * 4)                    # bias
        if need <= budget_bytes:
            return tho
    return smallest_valid


# ---------------------------------------------------------------------------
# Module forward (NCHW in / NCHW out, matching the PyTorch Downsample)
# ---------------------------------------------------------------------------

def downsample(x, w, b, *, mxu_dtype=jnp.bfloat16):
    B, C, H, W = x.shape
    Cout = w.shape[0]
    assert w.shape == (Cout, C, KH, KW)

    Ho = (H + 1 - KH) // STRIDE + 1
    Wo = (W + 1 - KW) // STRIDE + 1
    M = Ho * Wo
    Cp = _round_up(C, LANE)
    Coutp = _round_up(Cout, LANE)

    # --- glue: NCHW -> NHWC, zero pad bottom/right (+ channel lane pad) ------
    x_nhwc = jnp.transpose(x, (0, 2, 3, 1))
    h_need = STRIDE * (Ho - 1) + KH
    w_need = STRIDE * (Wo - 1) + KW
    x_pad = jnp.pad(
        x_nhwc,
        ((0, 0), (0, h_need - H), (0, w_need - W), (0, Cp - C)),
    ).astype(mxu_dtype)

    # --- glue: the 9 stride-2 taps as (tap, B, M, Cp) ------------------------
    # TODO(synk): at very large H*W this patch materialization could move
    # in-kernel via strided DMA (pl.ds(..., stride=2)) on a VMEM-resident tile.
    taps = []
    for kh in range(KH):
        for kw in range(KW):
            patch = x_pad[:, kh:kh + STRIDE * Ho:STRIDE,
                          kw:kw + STRIDE * Wo:STRIDE, :]      # (B, Ho, Wo, Cp)
            taps.append(patch.reshape(B, M, Cp))
    xk = jnp.stack(taps, axis=0)                               # (9, B, M, Cp)

    # --- glue: weights (tap, Cp, Coutp) bf16, lane-padded f32 bias -----------
    wk = jnp.transpose(w, (2, 3, 1, 0)).reshape(KH * KW, C, Cout)
    wk = jnp.pad(wk, ((0, 0), (0, Cp - C), (0, Coutp - Cout))).astype(mxu_dtype)
    bias = jnp.pad(b.astype(jnp.float32), (0, Coutp - Cout)).reshape(1, Coutp)

    # --- tiled, accumulating Pallas matmul -----------------------------------
    tho = _pick_row_tile(Ho, Wo, Cp, Coutp)
    tm = tho * Wo
    grid = (B, Ho // tho, KH * KW)

    out_flat = pl.pallas_call(
        _downsample_conv_kernel,
        out_shape=jax.ShapeDtypeStruct((B, M, Coutp), jnp.float32),
        grid=grid,
        in_specs=[
            pl.BlockSpec((1, 1, tm, Cp), lambda bi, mi, ki: (ki, bi, mi, 0)),
            pl.BlockSpec((KH * KW, Cp, Coutp), lambda bi, mi, ki: (0, 0, 0)),
            pl.BlockSpec((1, Coutp), lambda bi, mi, ki: (0, 0)),
        ],
        out_specs=pl.BlockSpec((1, tm, Coutp), lambda bi, mi, ki: (bi, mi, 0)),
        scratch_shapes=[pltpu.VMEM((tm, Coutp), jnp.float32)],
        compiler_params=pltpu.CompilerParams(
            dimension_semantics=("parallel", "parallel", "arbitrary"),
            vmem_limit_bytes=32 * 1024 * 1024,
        ),
    )(xk, wk, bias)

    # --- glue: drop channel padding, back to NCHW ----------------------------
    out = out_flat[:, :, :Cout].reshape(B, Ho, Wo, Cout)
    return jnp.transpose(out, (0, 3, 1, 2))


# ---------------------------------------------------------------------------
# XLA reference (same math; used only for the in-script correctness check)
# ---------------------------------------------------------------------------

def _reference_downsample(x, w, b):
    xp = jnp.pad(x, ((0, 0), (0, 0), (0, 1), (0, 1)))
    out = lax.conv_general_dilated(
        xp, w, window_strides=(STRIDE, STRIDE), padding="VALID",
        dimension_numbers=("NCHW", "OIHW", "NCHW"),
        precision=lax.Precision.HIGHEST)
    return out + b.reshape(1, -1, 1, 1)


# ---------------------------------------------------------------------------
# Main
# ---------------------------------------------------------------------------

if __name__ == "__main__":
    key = jax.random.PRNGKey(0)
    kx, kw_, kb = jax.random.split(key, 3)

    B, C, H, W = 2, 4, 16, 16
    x = jax.random.normal(kx, (B, C, H, W), jnp.float32)
    bound = 1.0 / (C * KH * KW) ** 0.5            # nn.Conv2d default init
    w = jax.random.uniform(kw_, (C, C, KH, KW), jnp.float32, -bound, bound)
    b = jax.random.uniform(kb, (C,), jnp.float32, -bound, bound)

    fwd = jax.jit(downsample)
    out = jax.block_until_ready(fwd(x, w, b))

    Ho = (H + 1 - KH) // STRIDE + 1
    Wo = (W + 1 - KW) // STRIDE + 1
    assert out.shape == (B, C, Ho, Wo), out.shape
    assert bool(jnp.all(jnp.isfinite(out)))

    # Compare against an XLA reference with the same bf16 operand quantization
    # (f32 accumulation in both paths).
    x_q = x.astype(jnp.bfloat16).astype(jnp.float32)
    w_q = w.astype(jnp.bfloat16).astype(jnp.float32)
    ref = _reference_downsample(x_q, w_q, b)
    assert bool(jnp.allclose(out, ref, atol=1e-3, rtol=1e-3)), (
        float(jnp.max(jnp.abs(out - ref))))

    print("KERNEL_OK")
</pallas_src>

<mosaic_0001>
module attributes {stable_mosaic.version = 11 : i64} {
  func.func @_downsample_conv_kernel(%arg0: i32, %arg1: i32, %arg2: i32, %arg3: memref<1x1x64x128xbf16, #tpu.memory_space<vmem>>, %arg4: memref<9x128x128xbf16, #tpu.memory_space<vmem>>, %arg5: memref<1x128xf32, #tpu.memory_space<vmem>>, %arg6: memref<1x64x128xf32, #tpu.memory_space<vmem>>, %arg7: memref<64x128xf32, #tpu.memory_space<vmem>>) attributes {dimension_semantics = [#tpu.dimension_semantics<parallel>, #tpu.dimension_semantics<parallel>, #tpu.dimension_semantics<arbitrary>], iteration_bounds = array<i64: 2, 1, 9>, scalar_prefetch = 0 : i64, scratch_operands = 1 : i64, tpu.core_type = #tpu.core_type<tc>, window_params = [{transform_indices = @transform_0, window_bounds = array<i64: 1, 1, 64, 128>}, {pipeline_mode = #tpu.pipeline_mode<synchronous>, transform_indices = @transform_1, window_bounds = array<i64: 9, 128, 128>}, {pipeline_mode = #tpu.pipeline_mode<synchronous>, transform_indices = @transform_2, window_bounds = array<i64: 1, 128>}, {transform_indices = @transform_3, window_bounds = array<i64: 1, 64, 128>}]} {
    %c0_i32 = arith.constant 0 : i32
    %0 = arith.cmpi eq, %arg2, %c0_i32 : i32
    %1 = arith.extui %0 : i1 to i32
    %c0_i32_0 = arith.constant 0 : i32
    %2 = arith.cmpi ne, %1, %c0_i32_0 : i32
    scf.if %2 {
      %cst_11 = arith.constant 0.000000e+00 : f32
      %15 = vector.broadcast %cst_11 : f32 to vector<64x128xf32>
      %c0_12 = arith.constant 0 : index
      %c0_13 = arith.constant 0 : index
      %16 = vector.load %arg7[%c0_12, %c0_13] : memref<64x128xf32, #tpu.memory_space<vmem>>, vector<64x128xf32>
      tpu.vector_store %arg7[%c0_12, %c0_13], %15 {strides = array<i32>} : memref<64x128xf32, #tpu.memory_space<vmem>>, vector<64x128xf32>,
    } else {
    }
    %c0 = arith.constant 0 : index
    %c0_1 = arith.constant 0 : index
    %3 = vector.load %arg7[%c0, %c0_1] : memref<64x128xf32, #tpu.memory_space<vmem>>, vector<64x128xf32>
    %c0_2 = arith.constant 0 : index
    %c0_3 = arith.constant 0 : index
    %c0_4 = arith.constant 0 : index
    %c0_5 = arith.constant 0 : index
    %4 = vector.load %arg3[%c0_2, %c0_3, %c0_4, %c0_5] : memref<1x1x64x128xbf16, #tpu.memory_space<vmem>>, vector<1x1x64x128xbf16>
    %5 = vector.shape_cast %4 : vector<1x1x64x128xbf16> to vector<64x128xbf16>
    %6 = arith.index_cast %arg2 : i32 to index
    %c0_6 = arith.constant 0 : index
    %c0_7 = arith.constant 0 : index
    %7 = vector.load %arg4[%6, %c0_6, %c0_7] : memref<9x128x128xbf16, #tpu.memory_space<vmem>>, vector<1x128x128xbf16>
    %8 = vector.shape_cast %7 : vector<1x128x128xbf16> to vector<128x128xbf16>
    %cst = arith.constant dense<0.000000e+00> : vector<64x128xf32>
    %9 = tpu.matmul %5, %8, %cst {dimension_numbers = #tpu.dot_dimension_numbers<[1], [0], [0], [1], [0, 0, 1, 1], [], []>} : vector<64x128xbf16>, vector<128x128xbf16>, vector<64x128xf32> -> vector<64x128xf32>
    %10 = arith.addf %3, %9 : vector<64x128xf32>
    %c0_8 = arith.constant 0 : index
    %c0_9 = arith.constant 0 : index
    %11 = vector.load %arg7[%c0_8, %c0_9] : memref<64x128xf32, #tpu.memory_space<vmem>>, vector<64x128xf32>
    tpu.vector_store %arg7[%c0_8, %c0_9], %10 {strides = array<i32>} : memref<64x128xf32, #tpu.memory_space<vmem>>, vector<64x128xf32>,
    %c8_i32 = arith.constant 8 : i32
    %12 = arith.cmpi eq, %arg2, %c8_i32 : i32
    %13 = arith.extui %12 : i1 to i32
    %c0_i32_10 = arith.constant 0 : i32
    %14 = arith.cmpi ne, %13, %c0_i32_10 : i32
    scf.if %14 {
      %c0_11 = arith.constant 0 : index
      %c0_12 = arith.constant 0 : index
      %15 = vector.load %arg7[%c0_11, %c0_12] : memref<64x128xf32, #tpu.memory_space<vmem>>, vector<64x128xf32>
      %c0_13 = arith.constant 0 : index
      %c0_14 = arith.constant 0 : index
      %16 = vector.load %arg5[%c0_13, %c0_14] : memref<1x128xf32, #tpu.memory_space<vmem>>, vector<1x128xf32>
      %17 = vector.broadcast %16 : vector<1x128xf32> to vector<64x128xf32>
      %18 = arith.addf %15, %17 : vector<64x128xf32>
      %c0_15 = arith.constant 0 : index
      %c0_16 = arith.constant 0 : index
      %c0_17 = arith.constant 0 : index
      %19 = vector.load %arg6[%c0_15, %c0_16, %c0_17] : memref<1x64x128xf32, #tpu.memory_space<vmem>>, vector<1x64x128xf32>
      %20 = vector.shape_cast %19 : vector<1x64x128xf32> to vector<64x128xf32>
      %21 = vector.shape_cast %18 : vector<64x128xf32> to vector<1x64x128xf32>
      tpu.vector_store %arg6[%c0_15, %c0_16, %c0_17], %21 {strides = array<i32>} : memref<1x64x128xf32, #tpu.memory_space<vmem>>, vector<1x64x128xf32>,
    } else {
    }
    return
  }
  func.func @transform_0(%arg0: i32, %arg1: i32, %arg2: i32) -> (i32, i32, i32, i32) {
    %c0_i32 = arith.constant 0 : i32
    %c0_i32_0 = arith.constant 0 : i32
    return %arg2, %arg0, %arg1, %c0_i32 : i32, i32, i32, i32
  }
  func.func @transform_1(%arg0: i32, %arg1: i32, %arg2: i32) -> (i32, i32, i32) {
    %c0_i32 = arith.constant 0 : i32
    %c0_i32_0 = arith.constant 0 : i32
    %c0_i32_1 = arith.constant 0 : i32
    %c0_i32_2 = arith.constant 0 : i32
    return %c0_i32, %c0_i32_0, %c0_i32_1 : i32, i32, i32
  }
  func.func @transform_2(%arg0: i32, %arg1: i32, %arg2: i32) -> (i32, i32) {
    %c0_i32 = arith.constant 0 : i32
    %c0_i32_0 = arith.constant 0 : i32
    %c0_i32_1 = arith.constant 0 : i32
    return %c0_i32, %c0_i32_0 : i32, i32
  }
  func.func @transform_3(%arg0: i32, %arg1: i32, %arg2: i32) -> (i32, i32, i32) {
    %c0_i32 = arith.constant 0 : i32
    %c0_i32_0 = arith.constant 0 : i32
    return %arg0, %arg1, %c0_i32 : i32, i32, i32
  }
}

</mosaic_0001>

<bundles_post_ra>
// kernel: downsample.1
= control target key start
LH: loop header
LB: loop body
LE: loop exit
PB: predicated region body
PF: predicated region fallthrough
CT: control target
= control target key end

     0   :  { %s765_s12 = smov 0   ;;  %s767_s13 = smov 0   ;;  %s855_s0 = inlined_call_operand.vmem [shape: bf16[9,2,64,128], index: 0, kind: input, shape index: {}]   ;;  %s856_s1 = inlined_call_operand.vmem [shape: bf16[9,128,128], index: 1, kind: input, shape index: {}]   ;;  %s857_s2 = inlined_call_operand.vmem [shape: f32[1,128], index: 2, kind: input, shape index: {}]   ;;  %s858_s3 = inlined_call_operand.vmem [shape: f32[2,64,128], index: 3, kind: output, shape index: {}]  }
   0x1   :  { %s769_s14 = smov 0   ;;  %s771_s15 = smov 0  }
   0x2   :  { %s773_s16 = smov 0  }
   0x3 LB: > { %s25_s17 = sadd.s32 1, %s734_s14  ;;  %s32_s18 = sadd.s32 1, %s738_s15  ;;  %s742_s16 = sphi %s773_s16, %s13_s16   ;;  %s738_s15 = sphi %s771_s15, %s862_s15   ;;  %s734_s14 = sphi %s769_s14, %s861_s14   ;;  %s730_s13 = sphi %s767_s13, %s860_s13   ;;  %s726_s12 = sphi %s765_s12, %s859_s12  }
   0x4   : > { %p26_p0 = scmp.ge.s32.totalorder %s25_s17, 9  ;;  %p572_p1 = scmp.ge.s32.totalorder %s742_s16, 1 }
   0x5   : > { %p171_p2 = scmp.lt.s32.totalorder %s742_s16, 19 }
   0x6   : > { %s864_s17 = smov (%p26_p0, %s25_s17), 0  ;;  %s866_s18 = smov (!%p26_p0, %s32_s18), %s738_s15 }
   0x7   : > { %p172_p3 = pnand %p572_p1, %p171_p2  ;;  %p34_p4 = scmp.ge.s32.totalorder %s866_s18, 2 }
   0x8   : > { %p208_p5 = scmp.lt.s32.totalorder (!%p172_p3), %s726_s12, 8  ;;  %p210_p6 = scmp.lt.s32.totalorder (!%p172_p3), %s730_s13, 1 }
   0x9   : > { %s868_s18 = smov (%p34_p4, %s866_s18), 0  ;;  %175 = sbr.rel (%p172_p3) target bundleno = 288 (0x120), region = 32 }
   0xa   : > { %p578_p7 = scmp.ne.s32.totalorder (!%p172_p3), %s726_s12, 0 }
  0x10   : > { %s209_s19 = scalar_select %p208_p5, %s726_s12, 8 }
  0x11   : > { %s870_s13 = smov (!%p210_p6, %s730_s13), 1  ;;  %235 = sbr.rel (%p578_p7) target bundleno = 24 (0x18), region = 36 }
  0x12   : > { %s574_s20 = sshll.u32 %s209_s19, 4  ;;  %s573_s21 = sshll.u32 %s870_s13, 3  ;;  %v744_v0 = vmov (!%p578_p7), 0.0  }
  0x13   : > { %s597_s22 = sshll.u32 %s870_s13, 6  ;;  %s217_s23 = sadd.s32 %s574_s20, %s573_s21  ;;  %236 = vst [vmem:[#allocation2] sm:$0xff] (!%p578_p7), %v744_v0  ;;  %237 = vst [vmem:[#allocation2 + $0x8] sm:$0xff] (!%p578_p7), %v744_v0 }
  0x14   : > { %s802_s26 = scalar_lea.vmem %s858_s3, %s597_s22  ;;  %s575_s27 = sshll.u32 %s217_s23, 2  ;;  %238 = vst [vmem:[#allocation2 + $0x10] sm:$0xff] (!%p578_p7), %v744_v0  ;;  %239 = vst [vmem:[#allocation2 + $0x18] sm:$0xff] (!%p578_p7), %v744_v0 }
  0x15   : > { %s807_s30 = scalar_lea.vmem %s855_s0, %s575_s27  ;;  %240 = vst [vmem:[#allocation2 + $0x20] sm:$0xff] (!%p578_p7), %v744_v0  ;;  %241 = vst [vmem:[#allocation2 + $0x28] sm:$0xff] (!%p578_p7), %v744_v0 }
  0x16   : > { %242 = vst [vmem:[#allocation2 + $0x30] sm:$0xff] (!%p578_p7), %v744_v0  ;;  %243 = vst [vmem:[#allocation2 + $0x38] sm:$0xff] (!%p578_p7), %v744_v0 }
  0x18 PF: > { %s598_s4 = sshll.u32 %s726_s12, 6  ;;  %v700_v1 = vld [vmem:[%s807_s30] sm:$0xff]   ;;  %v701_v2 = vld [vmem:[%s807_s30 + $0x10] sm:$0xff]   ;;  %v702_v11 = vld [vmem:[%s807_s30 + $0x8] sm:$0xff]   ;;  %p593_p8 = scmp.ne.s32.totalorder %s726_s12, 8 }
  0x19   : > { %s815_s7 = scalar_lea.vmem %s856_s1, %s598_s4  ;;  %627 = vmatprep.mubr.bf16.mxu0 %v700_v1  ;;  %631 = vmatprep.mubr.bf16.mxu1 %v701_v2  ;;  %v703_v12 = vld [vmem:[%s807_s30 + $0x18] sm:$0xff]   ;;  %v594_v38 = vld [vmem:[%s857_s2] ss:$0 sm:$0xff] (!%p593_p8) }
  0x1a   : > { %v692_v3 = vld [vmem:[%s815_s7] sm:$0xff]   ;;  %v693_v4 = vld [vmem:[%s815_s7 + $0x8] sm:$0xff]   ;;  %v694_v5 = vld [vmem:[%s815_s7 + $0x10] sm:$0xff]  }
  0x1b   : > { %611 = vmatprep.subr.bf16.mxu0 %v692_v3  ;;  %635 = vmatprep.subr.bf16.mxu1 %v692_v3  ;;  %v695_v6 = vld [vmem:[%s815_s7 + $0x18] sm:$0xff]   ;;  %v696_v7 = vld [vmem:[%s815_s7 + $0x20] sm:$0xff]   ;;  %v697_v8 = vld [vmem:[%s815_s7 + $0x28] sm:$0xff]  }
  0x1c   : > { %612 = vmatpush3.bf16.msra.mxu0 %v692_v3  ;;  %643 = vmatpush3.bf16.msra.mxu1 %v692_v3  ;;  %v698_v9 = vld [vmem:[%s815_s7 + $0x30] sm:$0xff]   ;;  %v699_v10 = vld [vmem:[%s815_s7 + $0x38] sm:$0xff]   ;;  %v244_v15 = vld [vmem:[#allocation2] sm:$0xff] }
  0x1d   : > { %613 = vmatprep.subr.bf16.mxu0 %v693_v4  ;;  %636 = vmatprep.subr.bf16.mxu1 %v693_v4  ;;  %v246_v13 = vld [vmem:[#allocation2 + $0x10] sm:$0xff]  ;;  %v248_v16 = vld [vmem:[#allocation2 + $0x20] sm:$0xff]  ;;  %v247_v19 = vld [vmem:[#allocation2 + $0x18] sm:$0xff] }
  0x1e   : > { %v250_v14 = vld [vmem:[#allocation2 + $0x30] sm:$0xff]  ;;  %v251_v20 = vld [vmem:[#allocation2 + $0x38] sm:$0xff]  ;;  %v245_v25 = vld [vmem:[#allocation2 + $0x8] sm:$0xff] }
  0x1f   : > { %v249_v26 = vld [vmem:[#allocation2 + $0x28] sm:$0xff] }
  0x20   : > { %614 = vmatpush3.bf16.msra.mxu0 %v693_v4  ;;  %644 = vmatpush3.bf16.msra.mxu1 %v693_v4 }
  0x21   : > { %615 = vmatprep.subr.bf16.mxu0 %v694_v5  ;;  %637 = vmatprep.subr.bf16.mxu1 %v694_v5 }
  0x24   : > { %616 = vmatpush3.bf16.msra.mxu0 %v694_v5  ;;  %645 = vmatpush3.bf16.msra.mxu1 %v694_v5 }
  0x25   : > { %617 = vmatprep.subr.bf16.mxu0 %v695_v6  ;;  %638 = vmatprep.subr.bf16.mxu1 %v695_v6 }
  0x28   : > { %618 = vmatpush3.bf16.msra.mxu0 %v695_v6  ;;  %646 = vmatpush3.bf16.msra.mxu1 %v695_v6 }
  0x29   : > { %619 = vmatprep.subr.bf16.mxu0 %v696_v7  ;;  %639 = vmatprep.subr.bf16.mxu1 %v696_v7 }
  0x2c   : > { %620 = vmatpush3.bf16.msra.mxu0 %v696_v7  ;;  %647 = vmatpush3.bf16.msra.mxu1 %v696_v7 }
  0x2d   : > { %621 = vmatprep.subr.bf16.mxu0 %v697_v8  ;;  %640 = vmatprep.subr.bf16.mxu1 %v697_v8 }
  0x30   : > { %622 = vmatpush3.bf16.msra.mxu0 %v697_v8  ;;  %648 = vmatpush3.bf16.msra.mxu1 %v697_v8 }
  0x31   : > { %623 = vmatprep.subr.bf16.mxu0 %v698_v9  ;;  %641 = vmatprep.subr.bf16.mxu1 %v698_v9 }
  0x34   : > { %624 = vmatpush3.bf16.msra.mxu0 %v698_v9  ;;  %649 = vmatpush3.bf16.msra.mxu1 %v698_v9 }
  0x35   : > { %625 = vmatprep.subr.bf16.mxu0 %v699_v10  ;;  %642 = vmatprep.subr.bf16.mxu1 %v699_v10 }
  0x38   : > { %626 = vmatpush3.bf16.msra.mxu0 %v699_v10  ;;  %650 = vmatpush3.bf16.msra.mxu1 %v699_v10 }
  0x3b   : > { %628 = vmatmul.mubr.bf16.vlgmr.msra.gmra.mrb[0].mxu0 %v702_v11  ;;  %632 = vmatmul.mubr.bf16.vlgmr.msra.gmra.mrb[0].mxu1 %v703_v12 }
 0x10e   : > { %v629_v17 = vpop.f32.mrb[0].mxu0  ;;  %v633_v18 = vpop.f32.mrb[0].mxu1  ;;  %435 = sbr.rel (%p593_p8) target bundleno = 288 (0x120), region = 40 }
 0x10f   : > { %v418_v21 = vadd.f32 %v629_v17, %v246_v13  ;;  %v422_v22 = vadd.f32 %v633_v18, %v250_v14  ;;  %v385_v23 = vpop.f32.mrb[1].mxu0  ;;  %v401_v24 = vpop.f32.mrb[1].mxu1 }
 0x110   : > { %v416_v27 = vadd.f32 %v385_v23, %v244_v15  ;;  %v420_v28 = vadd.f32 %v401_v24, %v248_v16  ;;  %v630_v29 = vpop.f32.mrb[2].mxu0  ;;  %v634_v30 = vpop.f32.mrb[2].mxu1 }
 0x111   : > { %426 = vst [vmem:[#allocation2 + $0x10] sm:$0xff] %v418_v21  ;;  %430 = vst [vmem:[#allocation2 + $0x30] sm:$0xff] %v422_v22  ;;  %v419_v31 = vadd.f32 %v630_v29, %v247_v19  ;;  %v423_v32 = vadd.f32 %v634_v30, %v251_v20  ;;  %v388_v33 = vpop.f32.mrb[3].mxu0  ;;  %v404_v34 = vpop.f32.mrb[3].mxu1 }
 0x112   : > { %424 = vst [vmem:[#allocation2] sm:$0xff] %v416_v27  ;;  %428 = vst [vmem:[#allocation2 + $0x20] sm:$0xff] %v420_v28  ;;  %v417_v35 = vadd.f32 %v388_v33, %v245_v25  ;;  %v421_v36 = vadd.f32 %v404_v34, %v249_v26 }
 0x113   : > { %427 = vst [vmem:[#allocation2 + $0x18] sm:$0xff] %v419_v31  ;;  %431 = vst [vmem:[#allocation2 + $0x38] sm:$0xff] %v423_v32 }
 0x114   : > { %425 = vst [vmem:[#allocation2 + $0x8] sm:$0xff] %v417_v35  ;;  %429 = vst [vmem:[#allocation2 + $0x28] sm:$0xff] %v421_v36 }
 0x118   : > { %v438_v42 = vld [vmem:[#allocation2 + $0x10] sm:$0xff] }
 0x119   : > { %v436_v37 = vld [vmem:[#allocation2] sm:$0xff]  ;;  %v453_v45 = vadd.f32 %v594_v38, %v438_v42  ;;  %v442_v49 = vld [vmem:[#allocation2 + $0x30] sm:$0xff] }
 0x11a   : > { %v451_v40 = vadd.f32 %v594_v38, %v436_v37  ;;  %v439_v43 = vld [vmem:[#allocation2 + $0x18] sm:$0xff]  ;;  %v440_v44 = vld [vmem:[#allocation2 + $0x20] sm:$0xff]  ;;  %v457_v52 = vadd.f32 %v594_v38, %v442_v49 }
 0x11b   : > { %v437_v39 = vld [vmem:[#allocation2 + $0x8] sm:$0xff]  ;;  %v454_v46 = vadd.f32 %v594_v38, %v439_v43  ;;  %v455_v47 = vadd.f32 %v594_v38, %v440_v44  ;;  %v443_v50 = vld [vmem:[#allocation2 + $0x38] sm:$0xff]  ;;  %461 = vst [vmem:[%s802_s26 + $0x10] sm:$0xff] %v453_v45 }
 0x11c   : > { %v452_v41 = vadd.f32 %v594_v38, %v437_v39  ;;  %v441_v48 = vld [vmem:[#allocation2 + $0x28] sm:$0xff]  ;;  %459 = vst [vmem:[%s802_s26] sm:$0xff] %v451_v40  ;;  %v458_v53 = vadd.f32 %v594_v38, %v443_v50  ;;  %465 = vst [vmem:[%s802_s26 + $0x30] sm:$0xff] %v457_v52 }
 0x11d   : > { %v456_v51 = vadd.f32 %v594_v38, %v441_v48  ;;  %462 = vst [vmem:[%s802_s26 + $0x18] sm:$0xff] %v454_v46  ;;  %463 = vst [vmem:[%s802_s26 + $0x20] sm:$0xff] %v455_v47 }
 0x11e   : > { %460 = vst [vmem:[%s802_s26 + $0x8] sm:$0xff] %v452_v41  ;;  %466 = vst [vmem:[%s802_s26 + $0x38] sm:$0xff] %v458_v53 }
 0x11f   : > { %464 = vst [vmem:[%s802_s26 + $0x28] sm:$0xff] %v456_v51 }
 0x120 PF: > { %s13_s16 = sadd.s32 1, %s742_s16   ;;  %s859_s12 = smov %s734_s14 }
 0x121   : > { %p10_p9 = scmp.ge.s32.totalorder %s13_s16, 20   ;;  %s860_s13 = smov %s738_s15 }
 0x122   : > { %s861_s14 = smov %s864_s17  ;;  %s862_s15 = smov %s868_s18 }
 0x123   :  { %12 = sbr.rel (!%p10_p9) target bundleno = 3 (0x3), region = 71 }

</bundles_post_ra>
